<compile_context>
chip_gen: v7x
topology: tpu7x:2x2x1
jax: 0.10.0
libtpu: 0.0.40
codegen_flags: <defaults>
</compile_context>

<pallas_src>
import math

import jax
import jax.numpy as jnp
from jax import lax
from jax.experimental import pallas as pl
from jax.experimental.pallas import tpu as pltpu

# ----------------------------- model hyper-params ---------------------------
HIDDEN_DIM = 32
NUM_CLASSES = 5          # -> class_embed outputs NUM_CLASSES + 1
NUM_QUERIES = 8
NUM_FRAMES = 2
BACKBONE_CHANNELS = 4
BATCH = 4                # videos per batch (n = BATCH * NUM_FRAMES frames)
H = W = 8                # -> S = NUM_FRAMES * H * W = 128 (lane-dense)

LANE = 128
NCLS = NUM_CLASSES + 1
SCALE = 1.0 / math.sqrt(HIDDEN_DIM)

# ---- data slab row layout (channels-major, lane dim = S) --------------------
R_SRC = 0                                   # rows 0..CB-1 : src channels
R_ONES = BACKBONE_CHANNELS                  # row CB       : ones (folds proj bias)
R_POS = BACKBONE_CHANNELS + 1               # next C rows  : positional encoding
R_MASK = BACKBONE_CHANNELS + 1 + HIDDEN_DIM  # 1 row        : additive key-pad bias
ROWS_D = ((R_MASK + 1 + 7) // 8) * 8        # pad to a multiple of 8 sublanes (=40)

# ---- bf16 weight slab row layout (all starts 16-aligned for bf16 packing) ---
ROW_QE = 0        # [NQ, C]   query_embed
ROW_PROJ = 16     # [C, CB+1] input_proj weight^T with bias as extra lane
ROW_HEAD1 = 48    # [C, 128]  fused head: cls_w lanes 0..5, bb_w1 lanes 64..95
ROW_W2 = 80       # [C, C]    bbox MLP layer 2
ROW_W3 = 112      # [C, 128]  bbox MLP layer 3 (lanes 0..3)
ROW_B1 = 144      # [1, 128]  cls_b lanes 0..5, bb_b1 lanes 64..95
ROW_B2 = 146      # [1, C]    bb_b2
ROW_B3 = 148      # [1, 128]  bb_b3 (lanes 0..3)
W_ROWS = 160
LANE_BB1 = 64     # bbox layer-1 columns inside the fused head weight


# ------------------------------ fused Pallas kernel --------------------------
def _vistr_fused_kernel(data_ref, w_ref, out_ref):
    """data_ref: [V, ROWS_D, S] f32 per-video slab (src | ones | pos | mask bias)
       w_ref   : [W_ROWS, 128] bf16 weight slab (resident across grid steps)
       out_ref : [V, 2*NQ, 128] f32 merged output (logits rows, then box rows)"""
    C = HIDDEN_DIM
    CB = BACKBONE_CHANNELS
    NQ = NUM_QUERIES
    V = out_ref.shape[0]

    # Resident bf16 weight slab -- static ref slices are free.
    q_bf = w_ref[ROW_QE:ROW_QE + NQ, 0:C]                        # [NQ, C]
    pwT = w_ref[ROW_PROJ:ROW_PROJ + C, 0:CB + 1]                 # [C, CB+1]
    wh1 = w_ref[ROW_HEAD1:ROW_HEAD1 + C, :]                      # [C, 128]
    w2 = w_ref[ROW_W2:ROW_W2 + C, 0:C]                           # [C, C]
    w3 = w_ref[ROW_W3:ROW_W3 + C, :]                             # [C, 128]
    b1 = w_ref[ROW_B1:ROW_B1 + 1, :].astype(jnp.float32)         # [1, 128]
    b2 = w_ref[ROW_B2:ROW_B2 + 1, 0:C].astype(jnp.float32)       # [1, C]
    b3 = w_ref[ROW_B3:ROW_B3 + 1, :].astype(jnp.float32)         # [1, 128]

    hs_list = []
    # Statically unrolled loop over the V videos of this grid step
    # (indices are Python ints -> every slice below is static).
    for v in range(V):
        d = data_ref[v]                                          # [ROWS_D, S] f32
        src_aug = d[R_SRC:R_ONES + 1, :].astype(jnp.bfloat16)    # [CB+1, S] (ones row)
        pos_cm = d[R_POS:R_POS + C, :]                           # [C, S]  f32
        maskb = d[R_MASK:R_MASK + 1, :]                          # [1, S]  0 / -1e9

        # ---- input_proj: 1x1 conv == channels-major matmul, bias folded ----
        mem = jnp.dot(pwT, src_aug, preferred_element_type=jnp.float32)   # [C, S]

        # ---- transformer stand-in: single pos-aware, key-padding-masked
        #      cross-attention from query embeddings to the memory ----
        # TODO(synk): full DETR-style 6-layer encoder/decoder (self-attn
        # stacks, FFNs, multi-layer decoder) not implemented.
        k = (mem + pos_cm).astype(jnp.bfloat16)                           # [C, S]
        s = jnp.dot(q_bf, k, preferred_element_type=jnp.float32) * SCALE  # [NQ, S]
        s = s + maskb
        s = s - jnp.max(s, axis=-1, keepdims=True)
        p = jnp.exp(s)
        p = p * pl.reciprocal(jnp.sum(p, axis=-1, keepdims=True), approx=True)
        hs_list.append(
            lax.dot_general(p.astype(jnp.bfloat16), mem.astype(jnp.bfloat16),
                            (((1,), (1,)), ((), ())),
                            preferred_element_type=jnp.float32))          # [NQ, C]

    # Stack all videos' query rows along sublanes -> one pass through the heads.
    hs = jnp.concatenate(hs_list, axis=0) if V > 1 else hs_list[0]        # [V*NQ, C]
    hs_bf = hs.astype(jnp.bfloat16)

    # ---- fused class head + bbox-MLP layer 1 (one MXU push) ----
    fused1 = jnp.dot(hs_bf, wh1, preferred_element_type=jnp.float32) + b1  # [V*NQ, 128]
    h1 = jnp.maximum(fused1[:, LANE_BB1:LANE_BB1 + C], 0.0)                # [V*NQ, C]
    h2 = jnp.maximum(
        jnp.dot(h1.astype(jnp.bfloat16), w2, preferred_element_type=jnp.float32) + b2,
        0.0)
    boxes = jax.nn.sigmoid(
        jnp.dot(h2.astype(jnp.bfloat16), w3, preferred_element_type=jnp.float32) + b3)

    # Merged lane-dense output: rows 0..NQ-1 = logits (lanes 0..NCLS-1 valid),
    # rows NQ..2NQ-1 = boxes (lanes 0..3 valid).
    for v in range(V):
        out_ref[v, 0:NQ, :] = fused1[v * NQ:(v + 1) * NQ, :].astype(out_ref.dtype)
        out_ref[v, NQ:2 * NQ, :] = boxes[v * NQ:(v + 1) * NQ, :].astype(out_ref.dtype)


# ------------------------------ parameter init -------------------------------
def init_params(key):
    ks = jax.random.split(key, 10)
    s = 0.05
    return {
        # input_proj: Conv2d(BACKBONE_CHANNELS, HIDDEN_DIM, kernel_size=1)
        "proj_w": s * jax.random.normal(ks[0], (BACKBONE_CHANNELS, HIDDEN_DIM), jnp.float32),
        "proj_b": s * jax.random.normal(ks[1], (1, HIDDEN_DIM), jnp.float32),
        # query_embed: Embedding(NUM_QUERIES, HIDDEN_DIM)
        "query_embed": jax.random.normal(ks[2], (NUM_QUERIES, HIDDEN_DIM), jnp.float32),
        # class_embed: Linear(HIDDEN_DIM, NUM_CLASSES + 1)
        "cls_w": s * jax.random.normal(ks[3], (HIDDEN_DIM, NCLS), jnp.float32),
        "cls_b": s * jax.random.normal(ks[4], (1, NCLS), jnp.float32),
        # bbox_embed: MLP(HIDDEN_DIM, HIDDEN_DIM, 4, 3)
        "bb_w1": s * jax.random.normal(ks[5], (HIDDEN_DIM, HIDDEN_DIM), jnp.float32),
        "bb_b1": s * jax.random.normal(ks[6], (1, HIDDEN_DIM), jnp.float32),
        "bb_w2": s * jax.random.normal(ks[7], (HIDDEN_DIM, HIDDEN_DIM), jnp.float32),
        "bb_b2": s * jax.random.normal(ks[8], (1, HIDDEN_DIM), jnp.float32),
        "bb_w3": s * jax.random.normal(ks[9], (HIDDEN_DIM, 4), jnp.float32),
        "bb_b3": jnp.zeros((1, 4), jnp.float32),
    }


def _group_size(b):
    """Largest V<=8 dividing b such that the grid keeps >=2 steps (when b>=2)."""
    best = 1
    for cand in range(1, min(b, 8) + 1):
        if b % cand == 0 and (b // cand) >= min(2, b):
            best = cand
    return best


# ------------------------------- VisTR forward -------------------------------
def vistr_forward(src, mask, pos, params):
    """src:  [n, C_backbone, h, w]  (NCHW, n = BATCH * NUM_FRAMES)
       mask: [n, h, w] bool (True = padded pixel)
       pos:  [BATCH, NUM_FRAMES, HIDDEN_DIM, h, w] positional encoding
    Returns {'pred_logits': [BATCH, NUM_QUERIES, NUM_CLASSES+1],
             'pred_boxes' : [BATCH, NUM_QUERIES, 4]}"""
    n, cb, h, w = src.shape
    b = n // NUM_FRAMES
    c = HIDDEN_DIM
    S = NUM_FRAMES * h * w
    nq = NUM_QUERIES

    # ---- one channels-major per-video data slab [b, ROWS_D, S] (lane dim = S).
    # Row order along S is (frame, h, w), matching the torch reshape/permute.
    src_cm = jnp.transpose(src.reshape(b, NUM_FRAMES, cb, h, w),
                           (0, 2, 1, 3, 4)).reshape(b, cb, S)
    pos_cm = jnp.transpose(pos, (0, 2, 1, 3, 4)).reshape(b, c, S)
    ones = jnp.ones((b, 1, S), jnp.float32)                      # folds input_proj bias
    mask_bias = jnp.where(mask.reshape(b, 1, S), jnp.float32(-1e9), jnp.float32(0.0))
    pad = jnp.zeros((b, ROWS_D - (cb + 1 + c + 1), S), jnp.float32)
    data = jnp.concatenate([src_cm, ones, pos_cm, mask_bias, pad], axis=1)

    # ---- one bf16 weight slab holding every parameter (resident in VMEM) ----
    wslab = jnp.zeros((W_ROWS, LANE), jnp.float32)
    wslab = wslab.at[ROW_QE:ROW_QE + nq, 0:c].set(params["query_embed"])
    wslab = wslab.at[ROW_PROJ:ROW_PROJ + c, 0:cb].set(params["proj_w"].T)
    wslab = wslab.at[ROW_PROJ:ROW_PROJ + c, cb].set(params["proj_b"][0])
    wslab = wslab.at[ROW_HEAD1:ROW_HEAD1 + c, 0:NCLS].set(params["cls_w"])
    wslab = wslab.at[ROW_HEAD1:ROW_HEAD1 + c, LANE_BB1:LANE_BB1 + c].set(params["bb_w1"])
    wslab = wslab.at[ROW_W2:ROW_W2 + c, 0:c].set(params["bb_w2"])
    wslab = wslab.at[ROW_W3:ROW_W3 + c, 0:4].set(params["bb_w3"])
    wslab = wslab.at[ROW_B1, 0:NCLS].set(params["cls_b"][0])
    wslab = wslab.at[ROW_B1, LANE_BB1:LANE_BB1 + c].set(params["bb_b1"][0])
    wslab = wslab.at[ROW_B2, 0:c].set(params["bb_b2"][0])
    wslab = wslab.at[ROW_B3, 0:4].set(params["bb_b3"][0])
    wslab = wslab.astype(jnp.bfloat16)

    V = _group_size(b)            # videos per grid step
    grid = (b // V,)              # kept >=2 steps when b>=2 (dual-TC on v7x)

    out = pl.pallas_call(
        _vistr_fused_kernel,
        grid=grid,
        in_specs=[
            pl.BlockSpec((V, ROWS_D, S), lambda g: (g, 0, 0)),   # per-group data slab
            pl.BlockSpec((W_ROWS, LANE), lambda g: (0, 0)),      # resident weight slab
        ],
        out_specs=pl.BlockSpec((V, 2 * nq, LANE), lambda g: (g, 0, 0)),
        out_shape=jax.ShapeDtypeStruct((b, 2 * nq, LANE), jnp.float32),
        compiler_params=pltpu.CompilerParams(dimension_semantics=("parallel",)),
    )(data, wslab)

    return {"pred_logits": out[:, :nq, :NCLS],
            "pred_boxes": out[:, nq:, :4]}


# ----------------------------- pure-JAX reference -----------------------------
def vistr_forward_ref(src, mask, pos, params):
    n, cb, h, w = src.shape
    b = n // NUM_FRAMES
    c = HIDDEN_DIM
    S = NUM_FRAMES * h * w
    x = jnp.transpose(src.reshape(b, NUM_FRAMES, cb, h, w), (0, 1, 3, 4, 2)).reshape(b, S, cb)
    mem = x @ params["proj_w"] + params["proj_b"]                      # [b, S, c]
    pe = jnp.transpose(pos, (0, 1, 3, 4, 2)).reshape(b, S, c)
    mb = jnp.where(mask.reshape(b, S), -1e9, 0.0).astype(jnp.float32)
    q = params["query_embed"]                                          # [NQ, c]
    s = jnp.einsum("qc,bsc->bqs", q, mem + pe) / jnp.sqrt(jnp.float32(c))
    s = s + mb[:, None, :]
    p = jax.nn.softmax(s, axis=-1)
    hs = jnp.einsum("bqs,bsc->bqc", p, mem)                            # [b, NQ, c]
    logits = hs @ params["cls_w"] + params["cls_b"]
    h1 = jax.nn.relu(hs @ params["bb_w1"] + params["bb_b1"])
    h2 = jax.nn.relu(h1 @ params["bb_w2"] + params["bb_b2"])
    boxes = jax.nn.sigmoid(h2 @ params["bb_w3"] + params["bb_b3"])
    return {"pred_logits": logits, "pred_boxes": boxes}


# ------------------------------------ main ------------------------------------
if __name__ == "__main__":
    key = jax.random.PRNGKey(0)
    k_src, k_pos, k_par = jax.random.split(key, 3)

    n = BATCH * NUM_FRAMES
    # Synthetic backbone outputs (real ResNet backbone is out of scope here).
    # TODO(synk): backbone (ResNet + positional-encoding Joiner) not implemented;
    # its outputs (features, mask, pos) are provided as inputs.
    src = jax.random.normal(k_src, (n, BACKBONE_CHANNELS, H, W), jnp.float32)
    mask = jnp.zeros((n, H, W), dtype=bool).at[:, :, W - 2:].set(True)  # some padded pixels
    pos = jax.random.normal(k_pos, (BATCH, NUM_FRAMES, HIDDEN_DIM, H, W), jnp.float32)

    params = init_params(k_par)

    out = vistr_forward(src, mask, pos, params)
    jax.block_until_ready(out)

    ref = vistr_forward_ref(src, mask, pos, params)
    assert out["pred_logits"].shape == (BATCH, NUM_QUERIES, NCLS)
    assert out["pred_boxes"].shape == (BATCH, NUM_QUERIES, 4)
    assert jnp.allclose(out["pred_logits"], ref["pred_logits"], atol=1e-2, rtol=1e-2)
    assert jnp.allclose(out["pred_boxes"], ref["pred_boxes"], atol=1e-2, rtol=1e-2)

    print("KERNEL_OK")
</pallas_src>

<mosaic_0001>
module attributes {stable_mosaic.version = 11 : i64} {
  func.func @_vistr_fused_kernel(%arg0: i32, %arg1: memref<2x40x128xf32, #tpu.memory_space<vmem>>, %arg2: memref<160x128xbf16, #tpu.memory_space<vmem>>, %arg3: memref<2x16x128xf32, #tpu.memory_space<vmem>>) attributes {dimension_semantics = [#tpu.dimension_semantics<parallel>], iteration_bounds = array<i64: 2>, scalar_prefetch = 0 : i64, scratch_operands = 0 : i64, tpu.core_type = #tpu.core_type<tc>, window_params = [{transform_indices = @transform_0, window_bounds = array<i64: 2, 40, 128>}, {pipeline_mode = #tpu.pipeline_mode<synchronous>, transform_indices = @transform_1, window_bounds = array<i64: 160, 128>}, {transform_indices = @transform_2, window_bounds = array<i64: 2, 16, 128>}]} {
    %c0 = arith.constant 0 : index
    %c0_0 = arith.constant 0 : index
    %0 = vector.load %arg2[%c0, %c0_0] : memref<160x128xbf16, #tpu.memory_space<vmem>>, vector<8x32xbf16>
    %c16 = arith.constant 16 : index
    %c0_1 = arith.constant 0 : index
    %1 = vector.load %arg2[%c16, %c0_1] : memref<160x128xbf16, #tpu.memory_space<vmem>>, vector<32x5xbf16>
    %c48 = arith.constant 48 : index
    %c0_2 = arith.constant 0 : index
    %2 = vector.load %arg2[%c48, %c0_2] : memref<160x128xbf16, #tpu.memory_space<vmem>>, vector<32x128xbf16>
    %c80 = arith.constant 80 : index
    %c0_3 = arith.constant 0 : index
    %3 = vector.load %arg2[%c80, %c0_3] : memref<160x128xbf16, #tpu.memory_space<vmem>>, vector<32x32xbf16>
    %c112 = arith.constant 112 : index
    %c0_4 = arith.constant 0 : index
    %4 = vector.load %arg2[%c112, %c0_4] : memref<160x128xbf16, #tpu.memory_space<vmem>>, vector<32x128xbf16>
    %c144 = arith.constant 144 : index
    %c0_5 = arith.constant 0 : index
    %5 = vector.load %arg2[%c144, %c0_5] : memref<160x128xbf16, #tpu.memory_space<vmem>>, vector<1x128xbf16>
    %6 = arith.extf %5 : vector<1x128xbf16> to vector<1x128xf32>
    %c146 = arith.constant 146 : index
    %c0_6 = arith.constant 0 : index
    %7 = vector.load %arg2[%c146, %c0_6] : memref<160x128xbf16, #tpu.memory_space<vmem>>, vector<1x32xbf16>
    %8 = arith.extf %7 : vector<1x32xbf16> to vector<1x32xf32>
    %c148 = arith.constant 148 : index
    %c0_7 = arith.constant 0 : index
    %9 = vector.load %arg2[%c148, %c0_7] : memref<160x128xbf16, #tpu.memory_space<vmem>>, vector<1x128xbf16>
    %10 = arith.extf %9 : vector<1x128xbf16> to vector<1x128xf32>
    %c0_8 = arith.constant 0 : index
    %c0_9 = arith.constant 0 : index
    %c0_10 = arith.constant 0 : index
    %11 = vector.load %arg1[%c0_8, %c0_9, %c0_10] : memref<2x40x128xf32, #tpu.memory_space<vmem>>, vector<1x40x128xf32>
    %12 = vector.shape_cast %11 : vector<1x40x128xf32> to vector<40x128xf32>
    %13 = vector.extract_strided_slice %12 {offsets = [0, 0], sizes = [5, 128], strides = [1, 1]} : vector<40x128xf32> to vector<5x128xf32>
    %14 = arith.truncf %13 : vector<5x128xf32> to vector<5x128xbf16>
    %15 = vector.extract_strided_slice %12 {offsets = [5, 0], sizes = [32, 128], strides = [1, 1]} : vector<40x128xf32> to vector<32x128xf32>
    %16 = vector.extract_strided_slice %12 {offsets = [37, 0], sizes = [1, 128], strides = [1, 1]} : vector<40x128xf32> to vector<1x128xf32>
    %cst = arith.constant dense<0.000000e+00> : vector<32x128xf32>
    %17 = tpu.matmul %1, %14, %cst {dimension_numbers = #tpu.dot_dimension_numbers<[1], [0], [0], [1], [0, 0, 1, 1], [], []>} : vector<32x5xbf16>, vector<5x128xbf16>, vector<32x128xf32> -> vector<32x128xf32>
    %18 = arith.addf %17, %15 : vector<32x128xf32>
    %19 = arith.truncf %18 : vector<32x128xf32> to vector<32x128xbf16>
    %cst_11 = arith.constant dense<0.000000e+00> : vector<8x128xf32>
    %20 = tpu.matmul %0, %19, %cst_11 {dimension_numbers = #tpu.dot_dimension_numbers<[1], [0], [0], [1], [0, 0, 1, 1], [], []>} : vector<8x32xbf16>, vector<32x128xbf16>, vector<8x128xf32> -> vector<8x128xf32>
    %cst_12 = arith.constant 0.176776692 : f32
    %21 = vector.broadcast %cst_12 : f32 to vector<8x128xf32>
    %22 = arith.mulf %20, %21 : vector<8x128xf32>
    %23 = vector.broadcast %16 : vector<1x128xf32> to vector<8x128xf32>
    %24 = arith.addf %22, %23 : vector<8x128xf32>
    %cst_13 = arith.constant dense<0xFF800000> : vector<8xf32>
    %25 = vector.multi_reduction <maximumf>, %24, %cst_13 [1] : vector<8x128xf32> to vector<8xf32>
    %26 = vector.shape_cast %25 : vector<8xf32> to vector<8x1xf32>
    %27 = vector.broadcast %26 : vector<8x1xf32> to vector<8x128xf32>
    %28 = arith.subf %24, %27 : vector<8x128xf32>
    %29 = math.exp %28 : vector<8x128xf32>
    %cst_14 = arith.constant dense<0.000000e+00> : vector<8xf32>
    %30 = vector.multi_reduction <add>, %29, %cst_14 [1] : vector<8x128xf32> to vector<8xf32>
    %31 = vector.shape_cast %30 : vector<8xf32> to vector<8x1xf32>
    %32 = tpu.reciprocal %31 {approx = true} : vector<8x1xf32> -> vector<8x1xf32>
    %33 = vector.broadcast %32 : vector<8x1xf32> to vector<8x128xf32>
    %34 = arith.mulf %29, %33 : vector<8x128xf32>
    %35 = arith.truncf %34 : vector<8x128xf32> to vector<8x128xbf16>
    %36 = arith.truncf %17 : vector<32x128xf32> to vector<32x128xbf16>
    %cst_15 = arith.constant dense<0.000000e+00> : vector<8x32xf32>
    %37 = tpu.matmul %35, %36, %cst_15 {dimension_numbers = #tpu.dot_dimension_numbers<[1], [1], [0], [0], [0, 0, 1, 0], [], []>} : vector<8x128xbf16>, vector<32x128xbf16>, vector<8x32xf32> -> vector<8x32xf32>
    %c1 = arith.constant 1 : index
    %c0_16 = arith.constant 0 : index
    %c0_17 = arith.constant 0 : index
    %38 = vector.load %arg1[%c1, %c0_16, %c0_17] : memref<2x40x128xf32, #tpu.memory_space<vmem>>, vector<1x40x128xf32>
    %39 = vector.shape_cast %38 : vector<1x40x128xf32> to vector<40x128xf32>
    %40 = vector.extract_strided_slice %39 {offsets = [0, 0], sizes = [5, 128], strides = [1, 1]} : vector<40x128xf32> to vector<5x128xf32>
    %41 = arith.truncf %40 : vector<5x128xf32> to vector<5x128xbf16>
    %42 = vector.extract_strided_slice %39 {offsets = [5, 0], sizes = [32, 128], strides = [1, 1]} : vector<40x128xf32> to vector<32x128xf32>
    %43 = vector.extract_strided_slice %39 {offsets = [37, 0], sizes = [1, 128], strides = [1, 1]} : vector<40x128xf32> to vector<1x128xf32>
    %cst_18 = arith.constant dense<0.000000e+00> : vector<32x128xf32>
    %44 = tpu.matmul %1, %41, %cst_18 {dimension_numbers = #tpu.dot_dimension_numbers<[1], [0], [0], [1], [0, 0, 1, 1], [], []>} : vector<32x5xbf16>, vector<5x128xbf16>, vector<32x128xf32> -> vector<32x128xf32>
    %45 = arith.addf %44, %42 : vector<32x128xf32>
    %46 = arith.truncf %45 : vector<32x128xf32> to vector<32x128xbf16>
    %cst_19 = arith.constant dense<0.000000e+00> : vector<8x128xf32>
    %47 = tpu.matmul %0, %46, %cst_19 {dimension_numbers = #tpu.dot_dimension_numbers<[1], [0], [0], [1], [0, 0, 1, 1], [], []>} : vector<8x32xbf16>, vector<32x128xbf16>, vector<8x128xf32> -> vector<8x128xf32>
    %cst_20 = arith.constant 0.176776692 : f32
    %48 = vector.broadcast %cst_20 : f32 to vector<8x128xf32>
    %49 = arith.mulf %47, %48 : vector<8x128xf32>
    %50 = vector.broadcast %43 : vector<1x128xf32> to vector<8x128xf32>
    %51 = arith.addf %49, %50 : vector<8x128xf32>
    %cst_21 = arith.constant dense<0xFF800000> : vector<8xf32>
    %52 = vector.multi_reduction <maximumf>, %51, %cst_21 [1] : vector<8x128xf32> to vector<8xf32>
    %53 = vector.shape_cast %52 : vector<8xf32> to vector<8x1xf32>
    %54 = vector.broadcast %53 : vector<8x1xf32> to vector<8x128xf32>
    %55 = arith.subf %51, %54 : vector<8x128xf32>
    %56 = math.exp %55 : vector<8x128xf32>
    %cst_22 = arith.constant dense<0.000000e+00> : vector<8xf32>
    %57 = vector.multi_reduction <add>, %56, %cst_22 [1] : vector<8x128xf32> to vector<8xf32>
    %58 = vector.shape_cast %57 : vector<8xf32> to vector<8x1xf32>
    %59 = tpu.reciprocal %58 {approx = true} : vector<8x1xf32> -> vector<8x1xf32>
    %60 = vector.broadcast %59 : vector<8x1xf32> to vector<8x128xf32>
    %61 = arith.mulf %56, %60 : vector<8x128xf32>
    %62 = arith.truncf %61 : vector<8x128xf32> to vector<8x128xbf16>
    %63 = arith.truncf %44 : vector<32x128xf32> to vector<32x128xbf16>
    %cst_23 = arith.constant dense<0.000000e+00> : vector<8x32xf32>
    %64 = tpu.matmul %62, %63, %cst_23 {dimension_numbers = #tpu.dot_dimension_numbers<[1], [1], [0], [0], [0, 0, 1, 0], [], []>} : vector<8x128xbf16>, vector<32x128xbf16>, vector<8x32xf32> -> vector<8x32xf32>
    %65 = tpu.concatenate %37, %64 in 0 : vector<8x32xf32>, vector<8x32xf32> -> vector<16x32xf32>
    %66 = arith.truncf %65 : vector<16x32xf32> to vector<16x32xbf16>
    %cst_24 = arith.constant dense<0.000000e+00> : vector<16x128xf32>
    %67 = tpu.matmul %66, %2, %cst_24 {dimension_numbers = #tpu.dot_dimension_numbers<[1], [0], [0], [1], [0, 0, 1, 1], [], []>} : vector<16x32xbf16>, vector<32x128xbf16>, vector<16x128xf32> -> vector<16x128xf32>
    %68 = vector.broadcast %6 : vector<1x128xf32> to vector<16x128xf32>
    %69 = arith.addf %67, %68 : vector<16x128xf32>
    %70 = vector.extract_strided_slice %69 {offsets = [0, 64], sizes = [16, 32], strides = [1, 1]} : vector<16x128xf32> to vector<16x32xf32>
    %cst_25 = arith.constant 0.000000e+00 : f32
    %71 = vector.broadcast %cst_25 : f32 to vector<16x32xf32>
    %72 = arith.maximumf %70, %71 : vector<16x32xf32>
    %73 = arith.truncf %72 : vector<16x32xf32> to vector<16x32xbf16>
    %cst_26 = arith.constant dense<0.000000e+00> : vector<16x32xf32>
    %74 = tpu.matmul %73, %3, %cst_26 {dimension_numbers = #tpu.dot_dimension_numbers<[1], [0], [0], [1], [0, 0, 1, 1], [], []>} : vector<16x32xbf16>, vector<32x32xbf16>, vector<16x32xf32> -> vector<16x32xf32>
    %75 = vector.broadcast %8 : vector<1x32xf32> to vector<16x32xf32>
    %76 = arith.addf %74, %75 : vector<16x32xf32>
    %cst_27 = arith.constant 0.000000e+00 : f32
    %77 = vector.broadcast %cst_27 : f32 to vector<16x32xf32>
    %78 = arith.maximumf %76, %77 : vector<16x32xf32>
    %79 = arith.truncf %78 : vector<16x32xf32> to vector<16x32xbf16>
    %cst_28 = arith.constant dense<0.000000e+00> : vector<16x128xf32>
    %80 = tpu.matmul %79, %4, %cst_28 {dimension_numbers = #tpu.dot_dimension_numbers<[1], [0], [0], [1], [0, 0, 1, 1], [], []>} : vector<16x32xbf16>, vector<32x128xbf16>, vector<16x128xf32> -> vector<16x128xf32>
    %81 = vector.broadcast %10 : vector<1x128xf32> to vector<16x128xf32>
    %82 = arith.addf %80, %81 : vector<16x128xf32>
    %83 = arith.negf %82 : vector<16x128xf32>
    %84 = math.exp %83 : vector<16x128xf32>
    %cst_29 = arith.constant 1.000000e+00 : f32
    %85 = vector.broadcast %cst_29 : f32 to vector<16x128xf32>
    %86 = arith.addf %85, %84 : vector<16x128xf32>
    %87 = arith.divf %85, %86 : vector<16x128xf32>
    %88 = vector.extract_strided_slice %69 {offsets = [0, 0], sizes = [8, 128], strides = [1, 1]} : vector<16x128xf32> to vector<8x128xf32>
    %c0_30 = arith.constant 0 : index
    %c0_31 = arith.constant 0 : index
    %c0_32 = arith.constant 0 : index
    %89 = vector.load %arg3[%c0_30, %c0_31, %c0_32] : memref<2x16x128xf32, #tpu.memory_space<vmem>>, vector<1x8x128xf32>
    %90 = vector.shape_cast %89 : vector<1x8x128xf32> to vector<8x128xf32>
    %91 = vector.shape_cast %88 : vector<8x128xf32> to vector<1x8x128xf32>
    tpu.vector_store %arg3[%c0_30, %c0_31, %c0_32], %91 {strides = array<i32>} : memref<2x16x128xf32, #tpu.memory_space<vmem>>, vector<1x8x128xf32>,
    %92 = vector.extract_strided_slice %87 {offsets = [0, 0], sizes = [8, 128], strides = [1, 1]} : vector<16x128xf32> to vector<8x128xf32>
    %c0_33 = arith.constant 0 : index
    %c8 = arith.constant 8 : index
    %c0_34 = arith.constant 0 : index
    %93 = vector.load %arg3[%c0_33, %c8, %c0_34] : memref<2x16x128xf32, #tpu.memory_space<vmem>>, vector<1x8x128xf32>
    %94 = vector.shape_cast %93 : vector<1x8x128xf32> to vector<8x128xf32>
    %95 = vector.shape_cast %92 : vector<8x128xf32> to vector<1x8x128xf32>
    tpu.vector_store %arg3[%c0_33, %c8, %c0_34], %95 {strides = array<i32>} : memref<2x16x128xf32, #tpu.memory_space<vmem>>, vector<1x8x128xf32>,
    %96 = vector.extract_strided_slice %69 {offsets = [8, 0], sizes = [8, 128], strides = [1, 1]} : vector<16x128xf32> to vector<8x128xf32>
    %c1_35 = arith.constant 1 : index
    %c0_36 = arith.constant 0 : index
    %c0_37 = arith.constant 0 : index
    %97 = vector.load %arg3[%c1_35, %c0_36, %c0_37] : memref<2x16x128xf32, #tpu.memory_space<vmem>>, vector<1x8x128xf32>
    %98 = vector.shape_cast %97 : vector<1x8x128xf32> to vector<8x128xf32>
    %99 = vector.shape_cast %96 : vector<8x128xf32> to vector<1x8x128xf32>
    tpu.vector_store %arg3[%c1_35, %c0_36, %c0_37], %99 {strides = array<i32>} : memref<2x16x128xf32, #tpu.memory_space<vmem>>, vector<1x8x128xf32>,
    %100 = vector.extract_strided_slice %87 {offsets = [8, 0], sizes = [8, 128], strides = [1, 1]} : vector<16x128xf32> to vector<8x128xf32>
    %c1_38 = arith.constant 1 : index
    %c8_39 = arith.constant 8 : index
    %c0_40 = arith.constant 0 : index
    %101 = vector.load %arg3[%c1_38, %c8_39, %c0_40] : memref<2x16x128xf32, #tpu.memory_space<vmem>>, vector<1x8x128xf32>
    %102 = vector.shape_cast %101 : vector<1x8x128xf32> to vector<8x128xf32>
    %103 = vector.shape_cast %100 : vector<8x128xf32> to vector<1x8x128xf32>
    tpu.vector_store %arg3[%c1_38, %c8_39, %c0_40], %103 {strides = array<i32>} : memref<2x16x128xf32, #tpu.memory_space<vmem>>, vector<1x8x128xf32>,
    return
  }
  func.func @transform_0(%arg0: i32) -> (i32, i32, i32) {
    %c0_i32 = arith.constant 0 : i32
    %c0_i32_0 = arith.constant 0 : i32
    %c0_i32_1 = arith.constant 0 : i32
    return %arg0, %c0_i32, %c0_i32_0 : i32, i32, i32
  }
  func.func @transform_1(%arg0: i32) -> (i32, i32) {
    %c0_i32 = arith.constant 0 : i32
    %c0_i32_0 = arith.constant 0 : i32
    %c0_i32_1 = arith.constant 0 : i32
    return %c0_i32, %c0_i32_0 : i32, i32
  }
  func.func @transform_2(%arg0: i32) -> (i32, i32, i32) {
    %c0_i32 = arith.constant 0 : i32
    %c0_i32_0 = arith.constant 0 : i32
    %c0_i32_1 = arith.constant 0 : i32
    return %arg0, %c0_i32, %c0_i32_0 : i32, i32, i32
  }
}

</mosaic_0001>

<bundles_post_ra>
// kernel: tpu_custom_call.1
= control target key start
LH: loop header
LB: loop body
LE: loop exit
PB: predicated region body
PF: predicated region fallthrough
CT: control target
= control target key end

     0   :  { %7 = vsyncpa [#allocation3], 0  ;;  %s1559_s0 = inlined_call_operand.hbm [shape: f32[4,40,128], index: 0, kind: input, shape index: {}]   ;;  %s1560_s1 = inlined_call_operand.hbm [shape: bf16[160,128], index: 1, kind: input, shape index: {}]   ;;  %s1561_s2 = inlined_call_operand.hbm [shape: f32[4,16,128], index: 2, kind: output, shape index: {}]  }
   0x1   :  { %9 = vsyncpa [#allocation3 + $0x1], 0 }
   0x2   :  { %10 = vsyncpa [#allocation6], 0 }
   0x3   :  { %11 = vsyncpa [#allocation4], 0 }
   0x4   :  { %13 = vsyncpa [#allocation4 + $0x1], 0  ;;  %s1286_s9 = smov 0   ;;  %s1288_s10 = smov 0  }
   0x5   :  { %s1290_s11 = smov 0   ;;  %s1292_s12 = smov 0  }
   0x6 LB: > { %s1307_s13 = sadd.s32 4294967295, %s1256_s12   ;;  %s895_s14 = sadd.s32 4294967294, %s1256_s12   ;;  %s1256_s12 = sphi %s1292_s12, %s1581_s12   ;;  %s1252_s11 = sphi %s1290_s11, %s1580_s11   ;;  %s1248_s10 = sphi %s1288_s10, %s1579_s10   ;;  %s1244_s9 = sphi %s1286_s9, %s1578_s9  }
   0x7   : > { %p39_p0 = scmp.ne.s32.totalorder %s1248_s10, %s1244_s9  ;;  %p1562_p1 = scmp.eq.s32.totalorder %s1307_s13, 0 }
   0x8   : > { %p90_p3 = scmp.eq.s32.totalorder %s895_s14, 1  ;;  %p896_p5 = scmp.ge.s32.totalorder %s1256_s12, 1 }
   0x9   : > { %p1316_p4 = por %p1562_p1, %p39_p0  ;;  %p97_p7 = scmp.lt.s32.totalorder %s1256_s12, 3 }
   0xa   : > { %p1321_p6 = por %p90_p3, %p39_p0  ;;  %s1258_s18 = smov [#allocation5]  }
   0xb   : > { %s1565_s15 = scalar_select %p1316_p4, 1, 0 }
   0xc   : > { %s1566_s16 = scalar_select %p1321_p6, 1, 0 }
   0xd   : > { %p1326_p8 = pnand %p896_p5, %p97_p7  ;;  %s109_s19 = sshll.u32 %s1258_s18, 4  ;;  %s1330_s19 = int_to_ptr.vmem [resolvable:$true] %s109_s19 }
   0xe   : > { %s1342_s21 = sadd.s32 1, %s1256_s12   ;;  %s26_s22 = sadd.s32 1, %s1252_s11 }
   0xf   : > { %s1567_s17 = scalar_select %p1326_p8, 1, 0 }
  0x10   : > { %p1045_p9 = pneg %p1326_p8  ;;  %s23_s23 = ssub.s32 %s1256_s12, %s1342_s21 }
  0x11   : > { %s1128_s26 = scalar_lea.hbm %s1560_s1, 1280 }
  0x12   : > { %p1337_p11 = pnand %p1045_p9, %p1562_p1  ;;  %p1129_p12 = scmp.ne.s32.totalorder %s1560_s1, %s1128_s26 }
  0x13   : > { %p1135_p5 = scmp.lt.u32.totalorder %s1128_s26, %s1560_s1 }
  0x14   : > { %p1130_p13 = pneg %p1337_p11 }
  0x16   : > { %p1131_p0 = pnand %p1130_p13, %p1129_p12 }
  0x18   : > { %p1132_p3 = pneg %p1131_p0 }
  0x1a   : > { %p1137_p7 = pnand %p1135_p5, %p1132_p3 }
  0x1c   : > { %1140 = shalt.err (!%p1137_p7)
}
  0x1d   : > { %s1141_s3 = scalar_lea.vmem %s1330_s19, 1280  ;;  %p1149_p2 = scmp.lt.s32.totalorder %s1330_s19, %s1330_s19 }
  0x1e   : > { %p1142_p9 = scmp.ne.s32.totalorder %s1330_s19, %s1141_s3  ;;  %p1150_p6 = scmp.lt.s32.totalorder %s1141_s3, %s1141_s3 }
  0x20   : > { %p1144_p10 = pnand %p1142_p9, %p1130_p13  ;;  %p1151_p4 = por %p1150_p6, %p1149_p2 }
  0x22   : > { %p1145_p1 = pneg %p1144_p10 }
  0x24   : > { %p1152_p8 = pnand %p1151_p4, %p1145_p1 }
  0x26   : > { %1155 = shalt.err (!%p1152_p8)
}
  0x27   : > { %s1259_s4 = smov 64   ;;  %s1260_s5 = smov 4  }
  0x28   : > { %1048 = dma.hbm_to_vmem [thread:$0]  (!%p1337_p11), %s1560_s1, 1280, %s1330_s19, [#allocation6], %s1259_s4, %s1259_s4, %s1260_s5  }
  0x29   : > { %p24_p2 = scmp.eq.s32.totalorder %s23_s23, 0  ;;  %p33_p1 = scmp.ne.s32.totalorder %s1252_s11, %s1248_s10 }
  0x2a   : > { %p34_p4 = scmp.eq.s32.totalorder %s1256_s12, 0  ;;  %p1058_p6 = scmp.lt.s32.totalorder %s1256_s12, 2 }
  0x2b   : > { %s1373_s8 = scalar_select %p24_p2, %s1252_s11, %s26_s22  }
  0x2c   : > { %p35_p8 = por %p34_p4, %p33_p1  ;;  %p1569_p10 = scmp.eq.s32.totalorder %s1307_s13, 1 }
  0x2d   : > { %s123_s18 = sand.u32 1, %s1252_s11   ;;  %s1035_s24 = smul.u32 1280, %s1256_s12 }
  0x2e   : > { %p1377_p12 = por %p1569_p10, %p33_p1  ;;  %s1034_s25 = smul.u32 80, %s123_s18 }
  0x2f   : > { %s1386_s27 = scalar_lea.hbm %s1559_s0, %s1035_s24  ;;  %p1388_p11 = pnand %p1058_p6, %p35_p8 }
  0x30   : > { %s127_s22 = scalar_lea.vmem [#allocation2], %s1034_s25  ;;  %s1394_s28 = scalar_lea.sflag [#allocation3], %s123_s18 }
  0x31   : > { %s135_s23 = sshll.u32 %s127_s22, 4  ;;  %s1156_s29 = scalar_lea.hbm %s1386_s27, 1280  ;;  %s1392_s23 = int_to_ptr.vmem [resolvable:$true] %s135_s23 }
  0x32   : > { %p1157_p13 = scmp.ne.s32.totalorder %s1386_s27, %s1156_s29  ;;  %p1158_p0 = pneg %p1388_p11 }
  0x33   : > { %s1161_s4 = scalar_lea.hbm %s1559_s0, 2560  ;;  %p1162_p7 = scmp.lt.u32.totalorder %s1386_s27, %s1559_s0 }
  0x34   : > { %p1159_p3 = pnand %p1158_p0, %p1157_p13  ;;  %p1163_p9 = scmp.lt.u32.totalorder %s1161_s4, %s1156_s29 }
  0x35   : > { %p1165_p1 = scmp.lt.u32.totalorder %s1156_s29, %s1386_s27 }
  0x36   : > { %p1160_p5 = pneg %p1159_p3  ;;  %p1164_p2 = por %p1163_p9, %p1162_p7 }
  0x38   : > { %p1166_p4 = por %p1165_p1, %p1164_p2 }
  0x3a   : > { %p1167_p6 = pnand %p1166_p4, %p1160_p5 }
  0x3c   : > { %1170 = shalt.err (!%p1167_p6)
}
  0x3d   : > { %s1171_s7 = scalar_lea.vmem %s1392_s23, 1280  ;;  %s1261_s18 = smov [#allocation2]  }
  0x3e   : > { %p1172_p8 = scmp.ne.s32.totalorder %s1392_s23, %s1171_s7  ;;  %s1176_s24 = sshll.u32 %s1261_s18, 4  ;;  %s1177_s24 = int_to_ptr.vmem [resolvable:$false] %s1176_s24 }
  0x3f   : > { %s1178_s25 = scalar_lea.vmem %s1177_s24, 2560  ;;  %p1179_p3 = scmp.lt.s32.totalorder %s1392_s23, %s1177_s24 }
  0x40   : > { %p1174_p10 = pnand %p1172_p8, %p1158_p0  ;;  %p1180_p7 = scmp.lt.s32.totalorder %s1178_s25, %s1171_s7 }
  0x42   : > { %p1175_p13 = pneg %p1174_p10  ;;  %p1181_p9 = por %p1180_p7, %p1179_p3 }
  0x44   : > { %p1182_p2 = pnand %p1181_p9, %p1175_p13 }
  0x46   : > { %1185 = shalt.err (!%p1182_p2)
}
  0x47   : > { %s1262_s20 = smov 128   ;;  %s1263_s26 = smov 8  }
  0x48   : > { %1052 = dma.hbm_to_vmem [thread:$0]  (!%p1388_p11), %s1386_s27, 1280, %s1392_s23, %s1394_s28, %s1262_s20, %s1262_s20, %s1263_s26  }
  0x49   : > { %p1572_p0 = scmp.ne.s32.totalorder %s1567_s17, 0 }
  0x4a   : > { %s1425_s22 = sand.u32 (!%p1572_p0), 1, %s1248_s10   ;;  %p1573_p5 = scmp.ne.s32.totalorder (!%p1572_p0), %s1565_s15, 0 }
  0x4b   : > { %147 = sbr.rel (%p1572_p0) target bundleno = 2111 (0x83f), region = 28  ;;  %s150_s30 = scalar_lea.sflag (!%p1572_p0), [#allocation3], %s1425_s22 }
  0x4c   : > { %s1036_s29 = smul.u32 (!%p1572_p0), 80, %s1425_s22 }
  0x4e   : > { %s1429_s3 = scalar_lea.vmem (!%p1572_p0), [#allocation2], %s1036_s29 }
  0x52   : > { %1231 = dma.done.wait (%p1573_p5), %s150_s30, 1280  }
  0x53   : > { %1233 = vsyncadd (%p1573_p5), %s150_s30, 4294966016  ;;  %p1574_p11 = scmp.eq.s32.totalorder %s1307_s13, 0 }
  0x55   : > { %1235 = dma.done.wait (%p1574_p11), [#allocation6], 1280   ;;  %p1575_p1 = pmov %p1574_p11 }
  0x56   : > { %vm227_vm0 = vcmask 1041408   ;;  %vm228_vm1 = vcmask 1042432   ;;  %v1264_v0 = vmov 65535   ;;  %v204_v2 = vld [vmem:[%s1429_s3] sm:$0xff]  ;;  %vm220_vm2 = vcmask 39936   ;;  %v1104_v5 = vld [vmem:[#allocation5 + $0x8] sm:$0xff]  }
  0x57   : > { %1237 = vsyncadd (%p1575_p1), [#allocation6], 4294966016  ;;  %v229_v1 = vsel %vm227_vm0, 4294967295, %v1264_v0  ;;  %v209_v4 = vpack.c.bf16 %v204_v2, %v204_v2  ;;  %968 = vmatprep.mubr.msk.bf16.mxu0 %vm220_vm2, %v1104_v5  ;;  %v1105_v7 = vld [vmem:[#allocation5 + $0x10] sm:$0xff]   ;;  %v1265_v8 = vmov 0.0   ;;  %vm1266_vm3 = vmmov 0  }
  0x58   : > { %v230_v3 = vsel %vm228_vm1, %v229_v1, 0  ;;  %972 = vmatprep.subr.bf16.mxu1 %v1265_v8  ;;  %976 = vmatprep.mubr.msk.bf16.mxu1 %vm1266_vm3, %v1265_v8  ;;  %v205_v9 = vld [vmem:[%s1429_s3 + $0x8] sm:$0xff]  ;;  %v206_v10 = vld [vmem:[%s1429_s3 + $0x10] sm:$0xff]  ;;  %v207_v11 = vld [vmem:[%s1429_s3 + $0x18] sm:$0xff]  ;;  %v288_v13 = vrot.slane %v204_v2, 5  ;;  %vm307_vm4 = vcmask 261120   ;;  %v352_v38 = vlaneseq }
  0x59   : > { %v232_v6 = vand.u32 %v230_v3, %v209_v4  ;;  %v208_v12 = vld [vmem:[%s1429_s3 + $0x20] sm:$0xff]  ;;  %v289_v14 = vrot.slane %v205_v9, 5  ;;  %v291_v15 = vrot.slane %v206_v10, 5  ;;  %v293_v16 = vrot.slane %v207_v11, 5  ;;  %v910_v24 = vld [vmem:[%s1429_s3 + $0x28] sm:$0xff]  ;;  %v912_v45 = vld [vmem:[%s1429_s3 + $0x38] sm:$0xff] }
  0x5a   : > { %v295_v17 = vrot.slane %v208_v12, 5  ;;  %v415_v33 = vpack.c.bf16 %v910_v24, %v910_v24  ;;  %v181_v37 = vld [vmem:[#allocation5] sm:$0xf]  ;;  %v1467_v39 = vshrl.u32 %v352_v38, 7  ;;  %v914_v47 = vld [vmem:[%s1429_s3 + $0x48] sm:$0xff]  ;;  %v476_v52 = vrot.slane %v912_v45, 5 }
  0x5b   : > { %966 = vmatprep.subr.bf16.mxu0 %v232_v6  ;;  %v290_v18 = vsel %vm228_vm1, %v288_v13, %v289_v14  ;;  %v294_v20 = vsel %vm228_vm1, %v291_v15, %v293_v16  ;;  %v292_v23 = vsel %vm228_vm1, %v289_v14, %v291_v15  ;;  %v913_v46 = vld [vmem:[%s1429_s3 + $0x40] sm:$0xff]  ;;  %v911_v49 = vld [vmem:[%s1429_s3 + $0x30] sm:$0xff]  ;;  %v480_v54 = vrot.slane %v914_v47, 5  ;;  %v1108_v45 = vld [vmem:[#allocation5 + $0x28] sm:$0xff]   ;;  %s904_s15 = sshll.u32 %s1425_s22, 5  ;;  %s1267_s27 = smov 64  }
  0x5c   : > { %967 = vmatpush3.bf16.msra.mxu0 %v232_v6  ;;  %v296_v21 = vsel %vm228_vm1, %v293_v16, %v295_v17  ;;  %v417_v36 = vand.u32 %v415_v33, %v230_v3  ;;  %v354_v40 = vsub.s32 5, %v1467_v39  ;;  %v478_v53 = vrot.slane %v913_v46, 5  ;;  %v1107_v38 = vld [vmem:[#allocation5 + $0x20] sm:$0xff]   ;;  %v1109_v46 = vld [vmem:[#allocation5 + $0x30] sm:$0xff]   ;;  %s1497_s17 = scalar_lea.vmem [#allocation7], %s904_s15  ;;  %s938_s23 = sshll.u32 %s1307_s13, 9 }
  0x5d   : > { %980 = vmatprep.subr.bf16.mxu0 %v1265_v8  ;;  %v473_v55 = vrot.slane %v910_v24, 5  ;;  %v474_v56 = vrot.slane %v911_v49, 5  ;;  %v593_v49 = vsub.s32 0, %v1467_v39  ;;  %s812_s19 = sshll.u32 %s1497_s17, 4  ;;  %s1513_s5 = scalar_lea.hbm %s1561_s2, %s938_s23  ;;  %s1508_s19 = int_to_ptr.vmem [resolvable:$true] %s812_s19 }
  0x5e   : > { %v355_v41 = vrot.slane %v208_v12, %v354_v40  ;;  %v479_v58 = vsel %vm228_vm1, %v476_v52, %v478_v53  ;;  %v481_v59 = vsel %vm228_vm1, %v478_v53, %v480_v54  ;;  %v536_v14 = vrot.slane %v914_v47, %v354_v40  ;;  %v198_v47 = vld [vmem:[#allocation5 + $0x48] sm:$0x1]  ;;  %s798_s6 = scalar_lea.sflag [#allocation4], %s1425_s22  ;;  %s1186_s7 = scalar_lea.vmem %s1508_s19, 512 }
  0x5f   : > { %969 = vmatmul.mubr.msk.bf16.vlgmr.msra.gmra.mrb[0].mxu0 %vm220_vm2, %v1105_v7  ;;  %v475_v61 = vsel %vm228_vm1, %v473_v55, %v474_v56  ;;  %v477_v62 = vsel %vm228_vm1, %v474_v56, %v476_v52  ;;  %p1187_p4 = scmp.ne.s32.totalorder %s1508_s19, %s1186_s7  ;;  %s1268_s13 = smov [#allocation7]  }
  0x60   : > { %984 = vmatprep.mubr.msk.bf16.mxu0 %vm1266_vm3, %v1265_v8  ;;  %s1190_s18 = sshll.u32 %s1268_s13, 4  ;;  %s1191_s18 = int_to_ptr.vmem [resolvable:$false] %s1190_s18 }
  0x61   : > { %p1188_p6 = pnand %p1187_p4, %p1377_p12  ;;  %s1192_s24 = scalar_lea.vmem %s1191_s18, 1024 }
  0x62   : > { %p1193_p10 = scmp.lt.s32.totalorder %s1508_s19, %s1191_s18  ;;  %p1194_p13 = scmp.lt.s32.totalorder %s1192_s24, %s1186_s7 }
  0x63   : > { %p1189_p8 = pneg %p1188_p6 }
  0x64   : > { %p1195_p3 = por %p1194_p13, %p1193_p10 }
  0x66   : > { %p1196_p7 = pnand %p1195_p3, %p1189_p8 }
 0x132   : > { %v970_v19 = vpop.f32.mrb[0].mxu0 }
 0x133   : > { %v268_v22 = vpop.f32.mrb[1].mxu0  ;;  %v303_v27 = vadd.f32 %v970_v19, %v294_v20 }
 0x134   : > { %v301_v25 = vadd.f32 %v290_v18, %v268_v22  ;;  %v971_v26 = vpop.f32.mrb[2].mxu0 }
 0x135   : > { %v304_v28 = vadd.f32 %v971_v26, %v296_v21  ;;  %v368_v29 = vpack.c.bf16 %v971_v26, %v970_v19  ;;  %v271_v30 = vpop.f32.mrb[3].mxu0 }
 0x136   : > { %v302_v31 = vadd.f32 %v292_v23, %v271_v30  ;;  %v367_v32 = vpack.c.bf16 %v271_v30, %v268_v22 }
 0x137   : > { %v306_v34 = vpack.c.bf16 %v304_v28, %v303_v27 }
 0x138   : > { %981 = vmatpush3.bf16.xpose.msra.mxu0 %v367_v32  ;;  %v305_v35 = vpack.c.bf16 %v302_v31, %v301_v25 }
 0x139   : > { %982 = vmatprep.subr.bf16.mxu0 %v1265_v8 }
 0x13a   : > { %973 = vmatpush3.bf16.msra.mxu1 %v305_v35 }
 0x13b   : > { %974 = vmatprep.subr.bf16.mxu1 %v1265_v8 }
 0x13e   : > { %975 = vmatpush3.bf16.msra.mxu1 %v306_v34 }
 0x13f   : > { %988 = vmatprep.subr.bf16.mxu1 %v417_v36 }
 0x140   : > { %983 = vmatpush3.bf16.xpose.msra.mxu0 %v368_v29  ;;  %v1106_v29 = vld [vmem:[#allocation5 + $0x18] sm:$0xff]  }
 0x141   : > { %977 = vmatmul.mubr.msk.bf16.vlgmr.msra.gmra.mrb[0].mxu1 %vm307_vm4, %v181_v37  ;;  %1002 = vmatprep.subr.bf16.mxu0 %v1265_v8 }
 0x142   : > { %989 = vmatpush3.bf16.msra.mxu1 %v417_v36  ;;  %990 = vmatprep.mubr.msk.bf16.mxu1 %vm220_vm2, %v1104_v5 }
 0x143   : > { %994 = vmatprep.subr.bf16.mxu1 %v1265_v8 }
 0x149   : > { %991 = vmatmul.mubr.msk.bf16.vlgmr.msra.gmra.mrb[4].mxu1 %vm220_vm2, %v1105_v7 }
 0x14a   : > { %998 = vmatprep.mubr.msk.bf16.mxu1 %vm1266_vm3, %v1265_v8 }
 0x214   : > { %v345_v42 = vpop.f32.mrb[0].mxu1 }
 0x215   : > { %v351_v43 = vmul.f32 0.17677669, %v345_v42  ;;  %v978_v44 = vpop.f32.mrb[1].mxu1 }
 0x216   : > { %v348_v48 = vpop.f32.mrb[2].mxu1 }
 0x217   : > { %v979_v50 = vpop.f32.mrb[3].mxu1  ;;  %v356_v51 = vadd.f32 %v355_v41, %v351_v43  ;;  %v199_v48 = vunpack.c.l.bf16 %v198_v47 }
 0x219   : > { %357 = vmax.xlane.f32.xlu0 %v356_v51  ;;  %v594_v50 = vrot.slane %v199_v48, %v593_v49 }
 0x21c   : > { %v992_v57 = vpop.f32.mrb[4].mxu1 }
 0x21d   : > { %v453_v60 = vpop.f32.mrb[5].mxu1  ;;  %v488_v0 = vadd.f32 %v992_v57, %v479_v58 }
 0x21e   : > { %v993_v63 = vpop.f32.mrb[6].mxu1  ;;  %v486_v4 = vadd.f32 %v475_v61, %v453_v60  ;;  %v1110_v61 = vld [vmem:[#allocation5 + $0x38] sm:$0xff]  }
 0x21f   : > { %v489_v1 = vadd.f32 %v993_v63, %v481_v59  ;;  %v549_v2 = vpack.c.bf16 %v993_v63, %v992_v57  ;;  %v456_v3 = vpop.f32.mrb[7].mxu1  ;;  %v200_v63 = vld [vmem:[#allocation5 + $0x48] sm:$0x2] }
 0x220   : > { %v487_v5 = vadd.f32 %v477_v62, %v456_v3  ;;  %v548_v6 = vpack.c.bf16 %v456_v3, %v453_v60  ;;  %v1111_v62 = vld [vmem:[#allocation5 + $0x40] sm:$0xff]  }
 0x221   : > { %v491_v7 = vpack.c.bf16 %v489_v1, %v488_v0  ;;  %v201_v0 = vunpack.c.l.bf16 %v200_v63  ;;  %v656_v1 = vsub.s32 2, %v1467_v39 }
 0x222   : > { %v490_v9 = vpack.c.bf16 %v487_v5, %v486_v4 }
 0x224   : > { %995 = vmatpush3.bf16.msra.mxu1 %v490_v9 }
 0x225   : > { %996 = vmatprep.subr.bf16.mxu1 %v1265_v8 }
 0x228   : > { %997 = vmatpush3.bf16.msra.mxu1 %v491_v7 }
 0x229   : > { %1010 = vmatprep.subr.bf16.mxu1 %v1265_v8 }
 0x22b   : > { %999 = vmatmul.mubr.msk.bf16.vlgmr.msra.gmra.mrb[8].mxu1 %vm307_vm4, %v181_v37 }
 0x22c   : > { %1014 = vmatprep.mubr.msk.bf16.mxu1 %vm1266_vm3, %v1265_v8  ;;  %1011 = vmatpush3.bf16.msra.mxu1 %v1106_v29 }
 0x22d   : > { %1012 = vmatprep.subr.bf16.mxu1 %v1265_v8 }
 0x230   : > { %1013 = vmatpush3.bf16.msra.mxu1 %v1107_v38 }
 0x231   : > { %1018 = vmatprep.subr.bf16.mxu1 %v1265_v8 }
 0x2a6   : > { %v358_v10 = vpop.xlane.xlu0 %357 }
 0x2a7   : > { %v359_v11 = vsub.f32 %v356_v51, %v358_v10 }
 0x2a9   : > { %v360_v12 = vmul.f32 1.442695, %v359_v11 }
 0x2ab   : > { %1112 = vpow2.f32 %v360_v12 }
 0x2b5   : > { %v1113_v13 = vpop.eup %1112 }
 0x2b6   : > { %362 = vadd.xlane.f32.xlu1 %v1113_v13 }
 0x2fe   : > { %v526_v15 = vpop.f32.mrb[8].mxu1 }
 0x2ff   : > { %v532_v16 = vmul.f32 0.17677669, %v526_v15  ;;  %v1000_v17 = vpop.f32.mrb[9].mxu1 }
 0x300   : > { %v529_v18 = vpop.f32.mrb[10].mxu1 }
 0x301   : > { %v1001_v19 = vpop.f32.mrb[11].mxu1  ;;  %v537_v20 = vadd.f32 %v536_v14, %v532_v16  ;;  %v722_v14 = vsub.s32 4, %v1467_v39 }
 0x303   : > { %538 = vmax.xlane.f32.xlu0 %v537_v20 }
 0x343   : > { %v363_v21 = vpop.xlane.xlu1 %362 }
 0x344   : > { %1114 = vrcp.f32 %v363_v21 }
 0x34e   : > { %v1115_v22 = vpop.eup %1114 }
 0x34f   : > { %v365_v23 = vmul.f32 %v1115_v22, %v1113_v13  ;;  %v202_v13 = vld [vmem:[#allocation5 + $0x48] sm:$0x4] }
 0x351   : > { %v366_v24 = vpack.c.bf16 %v365_v23, %v365_v23 }
 0x353   : > { %985 = vmatmul.mubr.bf16.vlgmr.msra.gmra.mrb[4].mxu0 %v366_v24 }
 0x354   : > { %1003 = vmatpush3.bf16.xpose.msra.mxu0 %v548_v6  ;;  %1006 = vmatprep.mubr.msk.bf16.mxu0 %vm1266_vm3, %v1265_v8 }
 0x355   : > { %1004 = vmatprep.subr.bf16.mxu0 %v1265_v8 }
 0x35c   : > { %1005 = vmatpush3.bf16.xpose.msra.mxu0 %v549_v2  ;;  %v657_v2 = vrot.slane %v201_v0, %v656_v1 }
 0x35d   : > { %1026 = vmatprep.subr.bf16.mxu0 %v1265_v8 }
 0x390   : > { %v539_v25 = vpop.xlane.xlu0 %538 }
 0x391   : > { %v540_v26 = vsub.f32 %v537_v20, %v539_v25 }
 0x393   : > { %v541_v27 = vmul.f32 1.442695, %v540_v26 }
 0x395   : > { %1116 = vpow2.f32 %v541_v27 }
 0x39f   : > { %v1117_v28 = vpop.eup %1116 }
 0x3a0   : > { %543 = vadd.xlane.f32.xlu1 %v1117_v28 }
 0x426   : > { %v403_v30 = vpop.f32.mrb[4].mxu0 }
 0x427   : > { %v986_v31 = vpop.f32.mrb[5].mxu0 }
 0x428   : > { %v406_v32 = vpop.f32.mrb[6].mxu0 }
 0x429   : > { %v987_v33 = vpop.f32.mrb[7].mxu0 }
 0x42d   : > { %v544_v34 = vpop.xlane.xlu1 %543 }
 0x42e   : > { %1118 = vrcp.f32 %v544_v34 }
 0x438   : > { %v1119_v35 = vpop.eup %1118 }
 0x439   : > { %v546_v36 = vmul.f32 %v1119_v35, %v1117_v28 }
 0x43b   : > { %v547_v37 = vpack.c.bf16 %v546_v36, %v546_v36 }
 0x43d   : > { %1007 = vmatmul.mubr.bf16.vlgmr.msra.gmra.mrb[8].mxu0 %v547_v37 }
 0x43e   : > { %1030 = vmatprep.mubr.msk.bf16.mxu0 %vm1266_vm3, %v1265_v8  ;;  %1027 = vmatpush3.bf16.msra.mxu0 %v1110_v61 }
 0x43f   : > { %1028 = vmatprep.subr.bf16.mxu0 %v1265_v8 }
 0x442   : > { %1029 = vmatpush3.bf16.msra.mxu0 %v1111_v62 }
 0x510   : > { %v584_v40 = vpop.f32.mrb[8].mxu0 }
 0x511   : > { %v590_v41 = vpack.c.bf16 %v584_v40, %v403_v30  ;;  %v1008_v42 = vpop.f32.mrb[9].mxu0 }
 0x512   : > { %v587_v43 = vpop.f32.mrb[10].mxu0 }
 0x513   : > { %v1009_v44 = vpop.f32.mrb[11].mxu0  ;;  %1015 = vmatmul.mubr.msk.bf16.vlgmr.msra.gmra.mrb[12].mxu1 %vm307_vm4, %v590_v41 }
 0x514   : > { %1022 = vmatprep.mubr.msk.bf16.mxu1 %vm1266_vm3, %v1265_v8  ;;  %1019 = vmatpush3.bf16.msra.mxu1 %v1108_v45 }
 0x515   : > { %1020 = vmatprep.subr.bf16.mxu1 %v1265_v8  ;;  %v203_v8 = vunpack.c.l.bf16 %v202_v13 }
 0x517   : > { %v723_v15 = vrot.slane %v203_v8, %v722_v14 }
 0x518   : > { %1021 = vmatpush3.bf16.msra.mxu1 %v1109_v46 }
 0x5e6   : > { %v644_v51 = vpop.f32.mrb[12].mxu1 }
 0x5e7   : > { %v645_v52 = vadd.f32 %v644_v51, %v594_v50  ;;  %v1016_v53 = vpop.f32.mrb[13].mxu1 }
 0x5e8   : > { %v647_v54 = vpop.f32.mrb[14].mxu1 }
 0x5e9   : > { %792 = vst [vmem:[%s1497_s17] sm:$0xff] %v645_v52  ;;  %v648_v55 = vadd.f32 %v647_v54, %v594_v50  ;;  %v1017_v56 = vpop.f32.mrb[15].mxu1  ;;  %v651_v57 = vmax.f32 %v645_v52, 0.0 }
 0x5eb   : > { %v652_v58 = vmax.f32 %v648_v55, 0.0  ;;  %929 = vst [vmem:[%s1497_s17 + $0x10] sm:$0xff] %v648_v55 }
 0x5ed   : > { %v653_v59 = vpack.c.bf16 %v652_v58, %v651_v57 }
 0x5ef   : > { %659 = vrot.lane.b32.xlu0 %v653_v59, %s1267_s27 }
 0x661   : > { %v660_v60 = vpop.permute.xlu0 %659 }
 0x662   : > { %1023 = vmatmul.mubr.msk.bf16.vlgmr.msra.gmra.mrb[16].mxu1 %vm307_vm4, %v660_v60 }
 0x735   : > { %v710_v3 = vpop.f32.mrb[16].mxu1 }
 0x736   : > { %v711_v4 = vadd.f32 %v710_v3, %v657_v2  ;;  %v1024_v5 = vpop.f32.mrb[17].mxu1 }
 0x737   : > { %v713_v6 = vpop.f32.mrb[18].mxu1 }
 0x738   : > { %v714_v7 = vadd.f32 %v713_v6, %v657_v2  ;;  %v1025_v9 = vpop.f32.mrb[19].mxu1  ;;  %v717_v10 = vmax.f32 %v711_v4, 0.0 }
 0x73a   : > { %v718_v11 = vmax.f32 %v714_v7, 0.0 }
 0x73c   : > { %v719_v12 = vpack.c.bf16 %v718_v11, %v717_v10 }
 0x73e   : > { %1031 = vmatmul.mubr.msk.bf16.vlgmr.msra.gmra.mrb[12].mxu0 %vm307_vm4, %v719_v12 }
 0x811   : > { %v773_v16 = vpop.f32.mrb[12].mxu0 }
 0x812   : > { %v774_v17 = vadd.f32 %v773_v16, %v723_v15  ;;  %v1032_v18 = vpop.f32.mrb[13].mxu0 }
 0x813   : > { %v776_v19 = vpop.f32.mrb[14].mxu0 }
 0x814   : > { %v927_v20 = vmul.f32 -1.442695, %v774_v17  ;;  %v777_v21 = vadd.f32 %v776_v19, %v723_v15  ;;  %v1033_v22 = vpop.f32.mrb[15].mxu0 }
 0x816   : > { %1120 = vpow2.f32 %v927_v20  ;;  %v928_v23 = vmul.f32 -1.442695, %v777_v21 }
 0x818   : > { %1122 = vpow2.f32 %v928_v23 }
 0x820   : > { %v1121_v24 = vpop.eup %1120 }
 0x821   : > { %v786_v25 = vadd.f32 1.0, %v1121_v24 }
 0x822   : > { %v1123_v39 = vpop.eup %1122 }
 0x823   : > { %1124 = vrcp.f32 %v786_v25  ;;  %v787_v26 = vadd.f32 1.0, %v1123_v39 }
 0x825   : > { %1126 = vrcp.f32 %v787_v26 }
 0x82d   : > { %v1125_v27 = vpop.eup %1124 }
 0x82e   : > { %793 = vst [vmem:[%s1497_s17 + $0x8] sm:$0xff] %v1125_v27 }
 0x82f   : > { %v1127_v28 = vpop.eup %1126 }
 0x830   : > { %930 = vst [vmem:[%s1497_s17 + $0x18] sm:$0xff] %v1127_v28 }
 0x831   : > { %1199 = shalt.err (!%p1196_p7)
}
 0x832   : > { %s1200_s25 = scalar_lea.hbm %s1513_s5, 512  ;;  %s1204_s29 = scalar_lea.hbm %s1561_s2, 1024 }
 0x833   : > { %p1201_p9 = scmp.ne.s32.totalorder %s1513_s5, %s1200_s25  ;;  %p1205_p5 = scmp.lt.u32.totalorder %s1513_s5, %s1561_s2 }
 0x834   : > { %p1206_p11 = scmp.lt.u32.totalorder %s1204_s29, %s1200_s25  ;;  %p1208_p4 = scmp.lt.u32.totalorder %s1200_s25, %s1513_s5 }
 0x835   : > { %p1202_p2 = pnand %p1201_p9, %p1377_p12 }
 0x836   : > { %p1207_p1 = por %p1206_p11, %p1205_p5 }
 0x837   : > { %p1203_p0 = pneg %p1202_p2 }
 0x838   : > { %p1209_p6 = por %p1208_p4, %p1207_p1 }
 0x83a   : > { %p1210_p8 = pnand %p1209_p6, %p1203_p0 }
 0x83c   : > { %1213 = shalt.err (!%p1210_p8)
}
 0x83d   : > { %s1269_s15 = smov 128   ;;  %s1270_s17 = smov 8  }
 0x83e   : > { %1043 = dma.vmem_to_hbm [thread:$0]  (%p1377_p12), %s1508_s19, 512, %s1513_s5, %s798_s6, %s1269_s15, %s1269_s15, %s1270_s17  }
 0x83f PF: > { %s827_s27 = sand.u32 1, %s1244_s9   ;;  %p1576_p10 = scmp.ne.s32.totalorder %s1566_s16, 0 }
 0x840   : > { %p1577_p13 = scmp.ge.s32.totalorder %s1256_s12, 2  ;;  %s828_s23 = scalar_lea.sflag [#allocation4], %s827_s27 }
 0x842   : > { %p1054_p3 = pnand %p1577_p13, %p1576_p10 }
 0x844   : > { %1239 = dma.done.wait (!%p1054_p3), %s828_s23, 512  }
 0x845   : > { %1241 = vsyncadd (!%p1054_p3), %s828_s23, 4294966784  ;;  %p16_p7 = scmp.ge.s32.totalorder %s1342_s21, 4   ;;  %s1578_s9 = smov %s1248_s10 }
 0x846   : > { %s1579_s10 = smov %s1252_s11  ;;  %s1580_s11 = smov %s1373_s8 }
 0x847   : > { %s1581_s12 = smov %s1342_s21  ;;  %18 = sbr.rel (!%p16_p7) target bundleno = 6 (0x6), region = 79 }
 0x84e   :  { %833 = vsyncpa [#allocation3], 1 }
 0x84f   :  { %835 = vsyncpa [#allocation3 + $0x1], 1 }
 0x850   :  { %836 = vsyncpa [#allocation6], 1 }
 0x851   :  { %837 = vsyncpa [#allocation4], 1 }
 0x852   :  { %839 = vsyncpa [#allocation4 + $0x1], 1 }

</bundles_post_ra>
